<compile_context>
chip_gen: v7x
topology: tpu7x:2x2x1
jax: 0.10.0
libtpu: 0.0.40
codegen_flags: <defaults>
</compile_context>

<pallas_src>
import functools

import jax
import jax.numpy as jnp
from jax.experimental import pallas as pl
from jax.experimental.pallas import tpu as pltpu


def _round_up(x, m):
    return ((x + m - 1) // m) * m


def _sublane_multiple(dtype):
    itemsize = jnp.dtype(dtype).itemsize
    return {4: 8, 2: 16, 1: 32}.get(itemsize, 8)


_BLOCK_BYTES_BUDGET = 4 * 1024 * 1024   # ~4 MiB per x / out block
_MAX_TILE_HW = 8192                      # lane-dense, keeps grid from collapsing


# --------------------------------------------------------------------------- #
# Kernels: elementwise time-gated (leaky) ReLU over a (TILE_BC, TILE_HW) tile.
# thr / alpha arrive as a (TILE_BC, 2) column pair (leaky) or a (TILE_BC, 1)
# column (non-leaky) and broadcast along the lane (HW) dimension.
# --------------------------------------------------------------------------- #
def _time_relu_leaky_kernel(x_ref, col_ref, o_ref):
    x = x_ref[...]                       # (TILE_BC, TILE_HW)
    col = col_ref[...]                   # (TILE_BC, 2) : [thr, alpha]
    thr = col[:, 0:1]
    alpha = col[:, 1:2]
    d = x - thr
    o_ref[...] = jnp.where(x > thr, d, alpha * d).astype(o_ref.dtype)


def _time_relu_kernel(x_ref, thr_ref, o_ref):
    x = x_ref[...]                       # (TILE_BC, TILE_HW)
    thr = thr_ref[...]                   # (TILE_BC, 1)
    o_ref[...] = jnp.maximum(x - thr, 0.0).astype(o_ref.dtype)


# --------------------------------------------------------------------------- #
# Wrapper
# --------------------------------------------------------------------------- #
@functools.partial(jax.jit, static_argnames=("leaky",))
def time_relu_cnn(X, times, params, leaky=True):
    """X: (B, C, H, W) (NCHW, as in PyTorch); times: (B, time_shape)."""
    B, C, H, W = X.shape
    HW = H * W
    BC = B * C

    # --- tiny MLP on the time embedding (plain jnp; no Pallas launch) --------
    h = jax.nn.relu(times @ params["w0"] + params["b0"])
    thr = (h @ params["w1"] + params["b1"]).astype(jnp.float32)        # (B, C)
    if leaky:
        ha = jax.nn.relu(times @ params["aw0"] + params["ab0"])
        alpha = (ha @ params["aw1"] + params["ab1"]).astype(jnp.float32)

    # --- tiling: sublane axis = B*C, lane axis = H*W --------------------------
    itemsize = jnp.dtype(X.dtype).itemsize
    sub = _sublane_multiple(X.dtype)                 # dtype-aware sublane rows

    TILE_HW = min(_round_up(HW, 128), _MAX_TILE_HW)  # multiple of 128 lanes
    rows_budget = max(
        sub, (_BLOCK_BYTES_BUDGET // (TILE_HW * itemsize)) // sub * sub)
    TILE_BC = min(_round_up(BC, sub), rows_budget)   # multiple of `sub` sublanes

    # No padding / no output slice: Pallas handles ragged edge blocks
    # (masked writes; garbage OOB reads never land in valid output).
    grid = (pl.cdiv(BC, TILE_BC), pl.cdiv(HW, TILE_HW))

    x2 = X.reshape(BC, HW)                           # contiguous view, no copy
    x_spec = pl.BlockSpec((TILE_BC, TILE_HW), lambda i, j: (i, j))
    out_spec = pl.BlockSpec((TILE_BC, TILE_HW), lambda i, j: (i, j))
    cparams = pltpu.CompilerParams(
        dimension_semantics=("parallel", "parallel"),
        vmem_limit_bytes=48 * 1024 * 1024)
    out_shape = jax.ShapeDtypeStruct((BC, HW), X.dtype)

    if leaky:
        # Fuse thr/alpha into one (BC, 2) column array -> single small DMA.
        col = jnp.stack([thr.reshape(BC), alpha.reshape(BC)], axis=1)  # (BC, 2)
        col_spec = pl.BlockSpec((TILE_BC, 2), lambda i, j: (i, 0))
        out = pl.pallas_call(
            _time_relu_leaky_kernel,
            out_shape=out_shape,
            grid_spec=pl.GridSpec(
                grid=grid, in_specs=[x_spec, col_spec], out_specs=out_spec),
            compiler_params=cparams,
        )(x2, col)
    else:
        thr2 = thr.reshape(BC, 1)
        col_spec = pl.BlockSpec((TILE_BC, 1), lambda i, j: (i, 0))
        out = pl.pallas_call(
            _time_relu_kernel,
            out_shape=out_shape,
            grid_spec=pl.GridSpec(
                grid=grid, in_specs=[x_spec, col_spec], out_specs=out_spec),
            compiler_params=cparams,
        )(x2, thr2)

    return out.reshape(B, C, H, W)


# --------------------------------------------------------------------------- #
# Pure-JAX reference matching the PyTorch forward (leaky=False == alpha 0).
# --------------------------------------------------------------------------- #
def reference(X, times, params, leaky=True):
    h = jax.nn.relu(times @ params["w0"] + params["b0"])
    thr = h @ params["w1"] + params["b1"]
    if leaky:
        ha = jax.nn.relu(times @ params["aw0"] + params["ab0"])
        alpha = ha @ params["aw1"] + params["ab1"]
    else:
        alpha = jnp.zeros_like(thr)
    thr = thr[:, :, None, None]
    alpha = alpha[:, :, None, None]
    return jnp.where(X > thr, X - thr, alpha * (X - thr))


def init_params(key, time_shape, data_shape):
    """Deterministic synthetic parameters.  Math layout: y = x @ W + b
    (W stored as (in, out); equivalent to PyTorch's (out, in) transposed)."""
    ks = jax.random.split(key, 8)
    hidden = 16
    s0 = 1.0 / jnp.sqrt(time_shape)
    s1 = 1.0 / jnp.sqrt(hidden)
    return {
        "w0": jax.random.normal(ks[0], (time_shape, hidden), jnp.float32) * s0,
        "b0": jax.random.normal(ks[1], (1, hidden), jnp.float32) * s0,
        "w1": jax.random.normal(ks[2], (hidden, data_shape), jnp.float32) * s1,
        "b1": jax.random.normal(ks[3], (1, data_shape), jnp.float32) * s1,
        "aw0": jax.random.normal(ks[4], (time_shape, hidden), jnp.float32) * s0,
        "ab0": jax.random.normal(ks[5], (1, hidden), jnp.float32) * s0,
        "aw1": jax.random.normal(ks[6], (hidden, data_shape), jnp.float32) * s1,
        "ab1": jax.random.normal(ks[7], (1, data_shape), jnp.float32) * s1,
    }


def _run_case(key, shape, time_shape):
    B, C, H, W = shape
    kx, kt, kp = jax.random.split(key, 3)
    X = jax.random.normal(kx, (B, C, H, W), jnp.float32)
    times = jax.random.normal(kt, (B, time_shape), jnp.float32)
    params = init_params(kp, time_shape, C)

    out = jax.block_until_ready(time_relu_cnn(X, times, params, leaky=True))
    ref = jax.block_until_ready(reference(X, times, params, leaky=True))
    assert out.shape == (B, C, H, W)
    assert jnp.allclose(out, ref, atol=1e-3, rtol=1e-3), f"leaky mismatch {shape}"

    out0 = jax.block_until_ready(time_relu_cnn(X, times, params, leaky=False))
    ref0 = jax.block_until_ready(reference(X, times, params, leaky=False))
    assert jnp.allclose(out0, ref0, atol=1e-3, rtol=1e-3), f"non-leaky mismatch {shape}"


if __name__ == "__main__":
    key = jax.random.PRNGKey(0)
    k1, k2 = jax.random.split(key, 2)

    # Aligned small case (B*C = 8 sublanes, H*W = 256 lanes).
    _run_case(k1, (2, 4, 16, 16), 8)

    # Unaligned case (B*C = 15, H*W = 63) exercises the ragged edge block
    # (no wrapper padding; Pallas masks the out-of-bounds writes).
    _run_case(k2, (3, 5, 7, 9), 8)

    print("KERNEL_OK")
</pallas_src>

<mosaic_0001>
module attributes {stable_mosaic.version = 11 : i64} {
  func.func @_time_relu_leaky_kernel(%arg0: i32, %arg1: i32, %arg2: memref<8x256xf32, #tpu.memory_space<vmem>>, %arg3: memref<8x2xf32, #tpu.memory_space<vmem>>, %arg4: memref<8x256xf32, #tpu.memory_space<vmem>>) attributes {dimension_semantics = [#tpu.dimension_semantics<parallel>, #tpu.dimension_semantics<parallel>], iteration_bounds = array<i64: 1, 1>, scalar_prefetch = 0 : i64, scratch_operands = 0 : i64, tpu.core_type = #tpu.core_type<tc>, window_params = [{transform_indices = @transform_0, window_bounds = array<i64: 8, 256>}, {transform_indices = @transform_1, window_bounds = array<i64: 8, 2>}, {transform_indices = @transform_2, window_bounds = array<i64: 8, 256>}]} {
    %c0 = arith.constant 0 : index
    %c0_0 = arith.constant 0 : index
    %0 = vector.load %arg2[%c0, %c0_0] : memref<8x256xf32, #tpu.memory_space<vmem>>, vector<8x256xf32>
    %c0_1 = arith.constant 0 : index
    %c0_2 = arith.constant 0 : index
    %1 = vector.load %arg3[%c0_1, %c0_2] : memref<8x2xf32, #tpu.memory_space<vmem>>, vector<8x2xf32>
    %2 = vector.extract_strided_slice %1 {offsets = [0, 0], sizes = [8, 1], strides = [1, 1]} : vector<8x2xf32> to vector<8x1xf32>
    %3 = vector.extract_strided_slice %1 {offsets = [0, 1], sizes = [8, 1], strides = [1, 1]} : vector<8x2xf32> to vector<8x1xf32>
    %4 = vector.broadcast %2 : vector<8x1xf32> to vector<8x256xf32>
    %5 = arith.subf %0, %4 : vector<8x256xf32>
    %6 = vector.broadcast %2 : vector<8x1xf32> to vector<8x256xf32>
    %7 = arith.cmpf ogt, %0, %6 : vector<8x256xf32>
    %8 = vector.broadcast %3 : vector<8x1xf32> to vector<8x256xf32>
    %9 = arith.mulf %8, %5 : vector<8x256xf32>
    %10 = arith.select %7, %5, %9 : vector<8x256xi1>, vector<8x256xf32>
    %c0_3 = arith.constant 0 : index
    %c0_4 = arith.constant 0 : index
    %11 = vector.load %arg4[%c0_3, %c0_4] : memref<8x256xf32, #tpu.memory_space<vmem>>, vector<8x256xf32>
    tpu.vector_store %arg4[%c0_3, %c0_4], %10 {strides = array<i32>} : memref<8x256xf32, #tpu.memory_space<vmem>>, vector<8x256xf32>,
    return
  }
  func.func @transform_0(%arg0: i32, %arg1: i32) -> (i32, i32) {
    %c0_i32 = arith.constant 0 : i32
    return %arg0, %arg1 : i32, i32
  }
  func.func @transform_1(%arg0: i32, %arg1: i32) -> (i32, i32) {
    %c0_i32 = arith.constant 0 : i32
    %c0_i32_0 = arith.constant 0 : i32
    return %arg0, %c0_i32 : i32, i32
  }
  func.func @transform_2(%arg0: i32, %arg1: i32) -> (i32, i32) {
    %c0_i32 = arith.constant 0 : i32
    return %arg0, %arg1 : i32, i32
  }
}

</mosaic_0001>

<bundles_post_ra>
// kernel: time_relu_cnn.1
= control target key start
LH: loop header
LB: loop body
LE: loop exit
PB: predicated region body
PF: predicated region fallthrough
CT: control target
= control target key end

     0   :  { %v41_v0 = vmov 0   ;;  %v42_v2 = vmov 1   ;;  %s73_s1 = inlined_call_operand.vmem [shape: f32[8,2], index: 1, kind: input, shape index: {}]   ;;  %s74_s0 = inlined_call_operand.vmem [shape: f32[8,256], index: 0, kind: input, shape index: {}]   ;;  %s75_s2 = inlined_call_operand.vmem [shape: f32[8,256], index: 2, kind: output, shape index: {}]  }
   0x1   :  { %39 = vset.pattern.permute.xlu0 %v41_v0  ;;  %v13_v1 = vld [vmem:[%s73_s1] sm:$0xff]  ;;  %v12_v5 = vld [vmem:[%s74_s0 + $0x8] sm:$0xff] }
   0x2   :  { %16 = vperm.xlu0 %39, %v13_v1   ;;  %v11_v4 = vld [vmem:[%s74_s0] sm:$0xff] }
   0x6   :  { %40 = vset.pattern.permute.xlu0 %v42_v2 }
   0x7   :  { %24 = vperm.xlu0 %40, %v13_v1  }
  0x81   :  { %v17_v3 = vpop.permute.xlu0 %16 }
  0x82   :  { %v19_v6 = vsub.f32 %v11_v4, %v17_v3  ;;  %v20_v7 = vsub.f32 %v12_v5, %v17_v3  ;;  %vm21_vm0 = vcmp.gt.f32.partialorder %v11_v4, %v17_v3  ;;  %vm22_vm1 = vcmp.gt.f32.partialorder %v12_v5, %v17_v3 }
  0x86   :  { %v25_v8 = vpop.permute.xlu0 %24 }
  0x87   :  { %v27_v9 = vmul.f32 %v25_v8, %v19_v6  ;;  %v28_v10 = vmul.f32 %v25_v8, %v20_v7 }
  0x89   :  { %v29_v11 = vsel %vm21_vm0, %v19_v6, %v27_v9  ;;  %v30_v12 = vsel %vm22_vm1, %v20_v7, %v28_v10 }
  0x8a   :  { %31 = vst [vmem:[%s75_s2] sm:$0xff] %v29_v11  ;;  %32 = vst [vmem:[%s75_s2 + $0x8] sm:$0xff] %v30_v12 }

</bundles_post_ra>
